<compile_context>
chip_gen: v7x
topology: tpu7x:2x2x1
jax: 0.10.0
libtpu: 0.0.40
codegen_flags: <defaults>
</compile_context>

<pallas_src>
import functools

import jax
import jax.numpy as jnp
from jax.experimental import pallas as pl
from jax.experimental.pallas import tpu as pltpu

LANE = 128


def _round_up(n, m):
    return (n + m - 1) // m * m


def _choose_token_tile(L, target=512):
    """Token (L) tile: full L if small, else a multiple of 8 dividing L."""
    if L <= target:
        return L
    tl = target - target % 8
    while tl >= 8:
        if L % tl == 0:
            return tl
        tl -= 8
    return L


def _pad_lane(a, new_last):
    pad = new_last - a.shape[-1]
    if pad == 0:
        return a
    return jnp.pad(a, [(0, 0)] * (a.ndim - 1) + [(0, pad)])


def _pad_params(params):
    """Zero-pad hidden/out feature dims to multiples of 128 (lane-dense matmuls and
    stores).  Zero padding keeps the math exact: padded lanes stay identically 0 and
    never cross the spike threshold."""
    D, H = params["w1"].shape
    O = params["w2"].shape[1]
    Hp, Op = _round_up(H, LANE), _round_up(O, LANE)
    padded = {
        "w1": jnp.pad(params["w1"], ((0, 0), (0, Hp - H))).astype(jnp.bfloat16),
        "w2": jnp.pad(params["w2"], ((0, Hp - H), (0, Op - O))).astype(jnp.bfloat16),
        "b1": _pad_lane(params["b1"], Hp).astype(jnp.float32),
        "g1": _pad_lane(params["g1"], Hp).astype(jnp.float32),
        "be1": _pad_lane(params["be1"], Hp).astype(jnp.float32),
        "b2": _pad_lane(params["b2"], Op).astype(jnp.float32),
        "g2": _pad_lane(params["g2"], Op).astype(jnp.float32),
        "be2": _pad_lane(params["be2"], Op).astype(jnp.float32),
    }
    return padded, H, O, Hp, Op


def _mlp_lif_kernel(x_ref, w1_ref, b1_ref, g1_ref, be1_ref,
                    w2_ref, b2_ref, g2_ref, be2_ref,
                    o_ref, v1_ref, v2_ref,
                    *, inv_tau, v_threshold, eps, inv_h, inv_o):
    t = pl.program_id(2)

    # LIF membranes start at 0 (spikingjelly LIFNode, v_reset=0.0) for every
    # (batch, token-tile) time sweep.
    @pl.when(t == 0)
    def _():
        v1_ref[...] = jnp.zeros_like(v1_ref)
        v2_ref[...] = jnp.zeros_like(v2_ref)

    # In-kernel cast to bf16 (VPU) keeps total pipeline HBM traffic minimal: no
    # separate wrapper-side convert pass over the whole activation tensor.
    x = x_ref[0, 0].astype(jnp.bfloat16)                         # (TL, D)

    # ---- fc1 (bf16 operands, f32 accumulation) + LayerNorm over true H lanes ----
    h = jnp.dot(x, w1_ref[...], preferred_element_type=jnp.float32) + b1_ref[...]
    mu = jnp.sum(h, axis=-1, keepdims=True) * inv_h              # padded lanes are 0
    var = jnp.sum(h * h, axis=-1, keepdims=True) * inv_h - mu * mu
    h = (h - mu) * jax.lax.rsqrt(var + eps) * g1_ref[...] + be1_ref[...]

    # ---- LIF #1 (decay_input=True, hard reset to 0) ----
    v1 = v1_ref[...] + (h - v1_ref[...]) * inv_tau
    s1 = (v1 >= v_threshold).astype(jnp.float32)
    v1_ref[...] = v1 * (1.0 - s1)

    # ---- fc2 + LayerNorm over true O lanes ----
    h2 = jnp.dot(s1.astype(jnp.bfloat16), w2_ref[...],
                 preferred_element_type=jnp.float32) + b2_ref[...]
    mu2 = jnp.sum(h2, axis=-1, keepdims=True) * inv_o
    var2 = jnp.sum(h2 * h2, axis=-1, keepdims=True) * inv_o - mu2 * mu2
    h2 = (h2 - mu2) * jax.lax.rsqrt(var2 + eps) * g2_ref[...] + be2_ref[...]

    # ---- LIF #2 ----
    v2 = v2_ref[...] + (h2 - v2_ref[...]) * inv_tau
    s2 = (v2 >= v_threshold).astype(jnp.float32)
    v2_ref[...] = v2 * (1.0 - s2)

    o_ref[0, 0] = s2


def mlp_forward(x, params, *, tau, common_thr, eps=1e-5):
    B, T, L, D = x.shape
    padded, H, O, Hp, Op = _pad_params(params)
    TL = _choose_token_tile(L)
    n_lt = L // TL

    kernel = functools.partial(
        _mlp_lif_kernel,
        inv_tau=float(1.0 / tau), v_threshold=float(common_thr),
        eps=float(eps), inv_h=float(1.0 / H), inv_o=float(1.0 / O))

    # Rough VMEM budget: double-buffered x/out tiles + resident weights + membrane
    # scratch + a few live (TL, Hp) f32 intermediates.  Capped at 64 MiB (v7x safe).
    est = (2 * (TL * D * 4 + TL * Op * 4)
           + 2 * (D * Hp + Hp * Op) * 2
           + TL * (Hp + Op) * 4
           + 4 * TL * Hp * 4)
    vmem_limit = int(min(max(2 * est, 32 * 1024 * 1024), 64 * 1024 * 1024))

    out = pl.pallas_call(
        kernel,
        out_shape=jax.ShapeDtypeStruct((B, T, L, Op), jnp.float32),
        grid_spec=pltpu.PrefetchScalarGridSpec(
            num_scalar_prefetch=0,
            grid=(B, n_lt, T),                            # time innermost (sequential)
            in_specs=[
                pl.BlockSpec((1, 1, TL, D), lambda b, l, t: (b, t, l, 0)),   # x (f32)
                pl.BlockSpec((D, Hp), lambda b, l, t: (0, 0)),               # w1
                pl.BlockSpec((1, Hp), lambda b, l, t: (0, 0)),               # b1
                pl.BlockSpec((1, Hp), lambda b, l, t: (0, 0)),               # ln1 gamma
                pl.BlockSpec((1, Hp), lambda b, l, t: (0, 0)),               # ln1 beta
                pl.BlockSpec((Hp, Op), lambda b, l, t: (0, 0)),              # w2
                pl.BlockSpec((1, Op), lambda b, l, t: (0, 0)),               # b2
                pl.BlockSpec((1, Op), lambda b, l, t: (0, 0)),               # ln2 gamma
                pl.BlockSpec((1, Op), lambda b, l, t: (0, 0)),               # ln2 beta
            ],
            out_specs=pl.BlockSpec((1, 1, TL, Op), lambda b, l, t: (b, t, l, 0)),
            scratch_shapes=[pltpu.VMEM((TL, Hp), jnp.float32),   # membrane v of lif1
                            pltpu.VMEM((TL, Op), jnp.float32)],  # membrane v of lif2
        ),
        compiler_params=pltpu.CompilerParams(
            dimension_semantics=("parallel", "parallel", "arbitrary"),
            vmem_limit_bytes=vmem_limit),
    )(x, padded["w1"], padded["b1"], padded["g1"], padded["be1"],
      padded["w2"], padded["b2"], padded["g2"], padded["be2"])

    return out[..., :O] if Op != O else out


def ref_forward(x, params, *, tau, common_thr, eps=1e-5):
    """Pure-JAX reference with the PyTorch module semantics, mirroring the kernel's
    numerics (bf16 matmul operands, f32 accumulation, true-count LayerNorm on the
    zero-padded feature dims)."""
    padded, H, O, Hp, Op = _pad_params(params)
    xt = jnp.transpose(x, (1, 0, 2, 3)).astype(jnp.bfloat16)     # (T,B,L,D)
    inv_tau = 1.0 / tau

    def ln(h, g, b, inv_n):
        mu = jnp.sum(h, -1, keepdims=True) * inv_n
        var = jnp.sum(h * h, -1, keepdims=True) * inv_n - mu * mu
        return (h - mu) * jax.lax.rsqrt(var + eps) * g + b

    def lif(h):
        def step(v, ht):
            v = v + (ht - v) * inv_tau
            s = (v >= common_thr).astype(jnp.float32)
            return v * (1.0 - s), s
        _, s = jax.lax.scan(step, jnp.zeros_like(h[0]), h)
        return s

    h1 = ln(jnp.einsum("tbld,dh->tblh", xt, padded["w1"],
                       preferred_element_type=jnp.float32) + padded["b1"],
            padded["g1"], padded["be1"], 1.0 / H)
    s1 = lif(h1)
    h2 = ln(jnp.einsum("tblh,ho->tblo", s1.astype(jnp.bfloat16), padded["w2"],
                       preferred_element_type=jnp.float32) + padded["b2"],
            padded["g2"], padded["be2"], 1.0 / O)
    s2 = lif(h2)
    return jnp.transpose(s2, (1, 0, 2, 3))[..., :O]


if __name__ == "__main__":
    # Small shapes consistent with the module: x is (B, T, L, D).
    B, T, L = 2, 4, 8
    D_IN, H, D_OUT = 16, 32, 16          # out_features defaults to in_features
    tau, common_thr = 2.0, 1.0

    key = jax.random.PRNGKey(0)
    kx, kw1, kb1, kw2, kb2 = jax.random.split(key, 5)

    x = jax.random.normal(kx, (B, T, L, D_IN), dtype=jnp.float32)

    params = {
        "w1": jax.random.normal(kw1, (D_IN, H), dtype=jnp.float32) * (1.0 / jnp.sqrt(D_IN)),
        "b1": jax.random.normal(kb1, (1, H), dtype=jnp.float32) * 0.1,
        "g1": jnp.ones((1, H), jnp.float32),      # LayerNorm default init: gamma=1
        "be1": jnp.zeros((1, H), jnp.float32),    # LayerNorm default init: beta=0
        "w2": jax.random.normal(kw2, (H, D_OUT), dtype=jnp.float32) * (1.0 / jnp.sqrt(H)),
        "b2": jax.random.normal(kb2, (1, D_OUT), dtype=jnp.float32) * 0.1,
        "g2": jnp.ones((1, D_OUT), jnp.float32),
        "be2": jnp.zeros((1, D_OUT), jnp.float32),
    }

    fwd = jax.jit(functools.partial(mlp_forward, tau=tau, common_thr=common_thr))
    out = fwd(x, params)
    out = jax.block_until_ready(out)

    assert out.shape == (B, T, L, D_OUT), out.shape
    ref = ref_forward(x, params, tau=tau, common_thr=common_thr)
    assert jnp.allclose(out, ref, atol=1e-4), float(jnp.abs(out - ref).max())

    print("KERNEL_OK")
</pallas_src>

<mosaic_0001>
module attributes {stable_mosaic.version = 11 : i64} {
  func.func @_mlp_lif_kernel(%arg0: i32, %arg1: i32, %arg2: i32, %arg3: memref<1x1x8x16xf32, #tpu.memory_space<vmem>>, %arg4: memref<16x128xbf16, #tpu.memory_space<vmem>>, %arg5: memref<1x128xf32, #tpu.memory_space<vmem>>, %arg6: memref<1x128xf32, #tpu.memory_space<vmem>>, %arg7: memref<1x128xf32, #tpu.memory_space<vmem>>, %arg8: memref<128x128xbf16, #tpu.memory_space<vmem>>, %arg9: memref<1x128xf32, #tpu.memory_space<vmem>>, %arg10: memref<1x128xf32, #tpu.memory_space<vmem>>, %arg11: memref<1x128xf32, #tpu.memory_space<vmem>>, %arg12: memref<1x1x8x128xf32, #tpu.memory_space<vmem>>, %arg13: memref<8x128xf32, #tpu.memory_space<vmem>>, %arg14: memref<8x128xf32, #tpu.memory_space<vmem>>) attributes {dimension_semantics = [#tpu.dimension_semantics<parallel>, #tpu.dimension_semantics<parallel>, #tpu.dimension_semantics<arbitrary>], iteration_bounds = array<i64: 2, 1, 4>, scalar_prefetch = 0 : i64, scratch_operands = 2 : i64, tpu.core_type = #tpu.core_type<tc>, window_params = [{transform_indices = @transform_0, window_bounds = array<i64: 1, 1, 8, 16>}, {pipeline_mode = #tpu.pipeline_mode<synchronous>, transform_indices = @transform_1, window_bounds = array<i64: 16, 128>}, {pipeline_mode = #tpu.pipeline_mode<synchronous>, transform_indices = @transform_2, window_bounds = array<i64: 1, 128>}, {pipeline_mode = #tpu.pipeline_mode<synchronous>, transform_indices = @transform_3, window_bounds = array<i64: 1, 128>}, {pipeline_mode = #tpu.pipeline_mode<synchronous>, transform_indices = @transform_4, window_bounds = array<i64: 1, 128>}, {pipeline_mode = #tpu.pipeline_mode<synchronous>, transform_indices = @transform_5, window_bounds = array<i64: 128, 128>}, {pipeline_mode = #tpu.pipeline_mode<synchronous>, transform_indices = @transform_6, window_bounds = array<i64: 1, 128>}, {pipeline_mode = #tpu.pipeline_mode<synchronous>, transform_indices = @transform_7, window_bounds = array<i64: 1, 128>}, {pipeline_mode = #tpu.pipeline_mode<synchronous>, transform_indices = @transform_8, window_bounds = array<i64: 1, 128>}, {transform_indices = @transform_9, window_bounds = array<i64: 1, 1, 8, 128>}]} {
    %c0_i32 = arith.constant 0 : i32
    %0 = arith.cmpi eq, %arg2, %c0_i32 : i32
    %1 = arith.extui %0 : i1 to i32
    %c0_i32_0 = arith.constant 0 : i32
    %2 = arith.cmpi ne, %1, %c0_i32_0 : i32
    scf.if %2 {
      %cst_53 = arith.constant 0.000000e+00 : f32
      %96 = vector.broadcast %cst_53 : f32 to vector<8x128xf32>
      %c0_54 = arith.constant 0 : index
      %c0_55 = arith.constant 0 : index
      %97 = vector.load %arg13[%c0_54, %c0_55] : memref<8x128xf32, #tpu.memory_space<vmem>>, vector<8x128xf32>
      tpu.vector_store %arg13[%c0_54, %c0_55], %96 {strides = array<i32>} : memref<8x128xf32, #tpu.memory_space<vmem>>, vector<8x128xf32>,
      %cst_56 = arith.constant 0.000000e+00 : f32
      %98 = vector.broadcast %cst_56 : f32 to vector<8x128xf32>
      %c0_57 = arith.constant 0 : index
      %c0_58 = arith.constant 0 : index
      %99 = vector.load %arg14[%c0_57, %c0_58] : memref<8x128xf32, #tpu.memory_space<vmem>>, vector<8x128xf32>
      tpu.vector_store %arg14[%c0_57, %c0_58], %98 {strides = array<i32>} : memref<8x128xf32, #tpu.memory_space<vmem>>, vector<8x128xf32>,
    } else {
    }
    %c0 = arith.constant 0 : index
    %c0_1 = arith.constant 0 : index
    %c0_2 = arith.constant 0 : index
    %c0_3 = arith.constant 0 : index
    %3 = vector.load %arg3[%c0, %c0_1, %c0_2, %c0_3] : memref<1x1x8x16xf32, #tpu.memory_space<vmem>>, vector<1x1x8x16xf32>
    %4 = vector.shape_cast %3 : vector<1x1x8x16xf32> to vector<8x16xf32>
    %5 = arith.truncf %4 : vector<8x16xf32> to vector<8x16xbf16>
    %c0_4 = arith.constant 0 : index
    %c0_5 = arith.constant 0 : index
    %6 = vector.load %arg4[%c0_4, %c0_5] : memref<16x128xbf16, #tpu.memory_space<vmem>>, vector<16x128xbf16>
    %cst = arith.constant dense<0.000000e+00> : vector<8x128xf32>
    %7 = tpu.matmul %5, %6, %cst {dimension_numbers = #tpu.dot_dimension_numbers<[1], [0], [0], [1], [0, 0, 1, 1], [], []>} : vector<8x16xbf16>, vector<16x128xbf16>, vector<8x128xf32> -> vector<8x128xf32>
    %c0_6 = arith.constant 0 : index
    %c0_7 = arith.constant 0 : index
    %8 = vector.load %arg5[%c0_6, %c0_7] : memref<1x128xf32, #tpu.memory_space<vmem>>, vector<1x128xf32>
    %9 = vector.broadcast %8 : vector<1x128xf32> to vector<8x128xf32>
    %10 = arith.addf %7, %9 : vector<8x128xf32>
    %cst_8 = arith.constant dense<0.000000e+00> : vector<8xf32>
    %11 = vector.multi_reduction <add>, %10, %cst_8 [1] : vector<8x128xf32> to vector<8xf32>
    %12 = vector.shape_cast %11 : vector<8xf32> to vector<8x1xf32>
    %cst_9 = arith.constant 3.125000e-02 : f32
    %13 = vector.broadcast %cst_9 : f32 to vector<8x1xf32>
    %14 = arith.mulf %12, %13 : vector<8x1xf32>
    %15 = arith.mulf %10, %10 : vector<8x128xf32>
    %cst_10 = arith.constant dense<0.000000e+00> : vector<8xf32>
    %16 = vector.multi_reduction <add>, %15, %cst_10 [1] : vector<8x128xf32> to vector<8xf32>
    %17 = vector.shape_cast %16 : vector<8xf32> to vector<8x1xf32>
    %cst_11 = arith.constant 3.125000e-02 : f32
    %18 = vector.broadcast %cst_11 : f32 to vector<8x1xf32>
    %19 = arith.mulf %17, %18 : vector<8x1xf32>
    %20 = arith.mulf %14, %14 : vector<8x1xf32>
    %21 = arith.subf %19, %20 : vector<8x1xf32>
    %22 = vector.broadcast %14 : vector<8x1xf32> to vector<8x128xf32>
    %23 = arith.subf %10, %22 : vector<8x128xf32>
    %cst_12 = arith.constant 9.99999974E-6 : f32
    %24 = vector.broadcast %cst_12 : f32 to vector<8x1xf32>
    %25 = arith.addf %21, %24 : vector<8x1xf32>
    %26 = math.rsqrt %25 : vector<8x1xf32>
    %27 = vector.broadcast %26 : vector<8x1xf32> to vector<8x128xf32>
    %28 = arith.mulf %23, %27 : vector<8x128xf32>
    %c0_13 = arith.constant 0 : index
    %c0_14 = arith.constant 0 : index
    %29 = vector.load %arg6[%c0_13, %c0_14] : memref<1x128xf32, #tpu.memory_space<vmem>>, vector<1x128xf32>
    %30 = vector.broadcast %29 : vector<1x128xf32> to vector<8x128xf32>
    %31 = arith.mulf %28, %30 : vector<8x128xf32>
    %c0_15 = arith.constant 0 : index
    %c0_16 = arith.constant 0 : index
    %32 = vector.load %arg7[%c0_15, %c0_16] : memref<1x128xf32, #tpu.memory_space<vmem>>, vector<1x128xf32>
    %33 = vector.broadcast %32 : vector<1x128xf32> to vector<8x128xf32>
    %34 = arith.addf %31, %33 : vector<8x128xf32>
    %c0_17 = arith.constant 0 : index
    %c0_18 = arith.constant 0 : index
    %35 = vector.load %arg13[%c0_17, %c0_18] : memref<8x128xf32, #tpu.memory_space<vmem>>, vector<8x128xf32>
    %c0_19 = arith.constant 0 : index
    %c0_20 = arith.constant 0 : index
    %36 = vector.load %arg13[%c0_19, %c0_20] : memref<8x128xf32, #tpu.memory_space<vmem>>, vector<8x128xf32>
    %37 = arith.subf %34, %36 : vector<8x128xf32>
    %cst_21 = arith.constant 5.000000e-01 : f32
    %38 = vector.broadcast %cst_21 : f32 to vector<8x128xf32>
    %39 = arith.mulf %37, %38 : vector<8x128xf32>
    %40 = arith.addf %35, %39 : vector<8x128xf32>
    %cst_22 = arith.constant 1.000000e+00 : f32
    %41 = vector.broadcast %cst_22 : f32 to vector<8x128xf32>
    %42 = arith.cmpf oge, %40, %41 : vector<8x128xf32>
    %43 = arith.extui %42 : vector<8x128xi1> to vector<8x128xi32>
    %44 = arith.sitofp %43 : vector<8x128xi32> to vector<8x128xf32>
    %cst_23 = arith.constant 1.000000e+00 : f32
    %45 = vector.broadcast %cst_23 : f32 to vector<8x128xf32>
    %46 = arith.subf %45, %44 : vector<8x128xf32>
    %47 = arith.mulf %40, %46 : vector<8x128xf32>
    %c0_24 = arith.constant 0 : index
    %c0_25 = arith.constant 0 : index
    %48 = vector.load %arg13[%c0_24, %c0_25] : memref<8x128xf32, #tpu.memory_space<vmem>>, vector<8x128xf32>
    tpu.vector_store %arg13[%c0_24, %c0_25], %47 {strides = array<i32>} : memref<8x128xf32, #tpu.memory_space<vmem>>, vector<8x128xf32>,
    %49 = arith.truncf %44 : vector<8x128xf32> to vector<8x128xbf16>
    %c0_26 = arith.constant 0 : index
    %c0_27 = arith.constant 0 : index
    %50 = vector.load %arg8[%c0_26, %c0_27] : memref<128x128xbf16, #tpu.memory_space<vmem>>, vector<128x128xbf16>
    %cst_28 = arith.constant dense<0.000000e+00> : vector<8x128xf32>
    %51 = tpu.matmul %49, %50, %cst_28 {dimension_numbers = #tpu.dot_dimension_numbers<[1], [0], [0], [1], [0, 0, 1, 1], [], []>} : vector<8x128xbf16>, vector<128x128xbf16>, vector<8x128xf32> -> vector<8x128xf32>
    %c0_29 = arith.constant 0 : index
    %c0_30 = arith.constant 0 : index
    %52 = vector.load %arg9[%c0_29, %c0_30] : memref<1x128xf32, #tpu.memory_space<vmem>>, vector<1x128xf32>
    %53 = vector.broadcast %52 : vector<1x128xf32> to vector<8x128xf32>
    %54 = arith.addf %51, %53 : vector<8x128xf32>
    %cst_31 = arith.constant dense<0.000000e+00> : vector<8xf32>
    %55 = vector.multi_reduction <add>, %54, %cst_31 [1] : vector<8x128xf32> to vector<8xf32>
    %56 = vector.shape_cast %55 : vector<8xf32> to vector<8x1xf32>
    %cst_32 = arith.constant 6.250000e-02 : f32
    %57 = vector.broadcast %cst_32 : f32 to vector<8x1xf32>
    %58 = arith.mulf %56, %57 : vector<8x1xf32>
    %59 = arith.mulf %54, %54 : vector<8x128xf32>
    %cst_33 = arith.constant dense<0.000000e+00> : vector<8xf32>
    %60 = vector.multi_reduction <add>, %59, %cst_33 [1] : vector<8x128xf32> to vector<8xf32>
    %61 = vector.shape_cast %60 : vector<8xf32> to vector<8x1xf32>
    %cst_34 = arith.constant 6.250000e-02 : f32
    %62 = vector.broadcast %cst_34 : f32 to vector<8x1xf32>
    %63 = arith.mulf %61, %62 : vector<8x1xf32>
    %64 = arith.mulf %58, %58 : vector<8x1xf32>
    %65 = arith.subf %63, %64 : vector<8x1xf32>
    %66 = vector.broadcast %58 : vector<8x1xf32> to vector<8x128xf32>
    %67 = arith.subf %54, %66 : vector<8x128xf32>
    %cst_35 = arith.constant 9.99999974E-6 : f32
    %68 = vector.broadcast %cst_35 : f32 to vector<8x1xf32>
    %69 = arith.addf %65, %68 : vector<8x1xf32>
    %70 = math.rsqrt %69 : vector<8x1xf32>
    %71 = vector.broadcast %70 : vector<8x1xf32> to vector<8x128xf32>
    %72 = arith.mulf %67, %71 : vector<8x128xf32>
    %c0_36 = arith.constant 0 : index
    %c0_37 = arith.constant 0 : index
    %73 = vector.load %arg10[%c0_36, %c0_37] : memref<1x128xf32, #tpu.memory_space<vmem>>, vector<1x128xf32>
    %74 = vector.broadcast %73 : vector<1x128xf32> to vector<8x128xf32>
    %75 = arith.mulf %72, %74 : vector<8x128xf32>
    %c0_38 = arith.constant 0 : index
    %c0_39 = arith.constant 0 : index
    %76 = vector.load %arg11[%c0_38, %c0_39] : memref<1x128xf32, #tpu.memory_space<vmem>>, vector<1x128xf32>
    %77 = vector.broadcast %76 : vector<1x128xf32> to vector<8x128xf32>
    %78 = arith.addf %75, %77 : vector<8x128xf32>
    %c0_40 = arith.constant 0 : index
    %c0_41 = arith.constant 0 : index
    %79 = vector.load %arg14[%c0_40, %c0_41] : memref<8x128xf32, #tpu.memory_space<vmem>>, vector<8x128xf32>
    %c0_42 = arith.constant 0 : index
    %c0_43 = arith.constant 0 : index
    %80 = vector.load %arg14[%c0_42, %c0_43] : memref<8x128xf32, #tpu.memory_space<vmem>>, vector<8x128xf32>
    %81 = arith.subf %78, %80 : vector<8x128xf32>
    %cst_44 = arith.constant 5.000000e-01 : f32
    %82 = vector.broadcast %cst_44 : f32 to vector<8x128xf32>
    %83 = arith.mulf %81, %82 : vector<8x128xf32>
    %84 = arith.addf %79, %83 : vector<8x128xf32>
    %cst_45 = arith.constant 1.000000e+00 : f32
    %85 = vector.broadcast %cst_45 : f32 to vector<8x128xf32>
    %86 = arith.cmpf oge, %84, %85 : vector<8x128xf32>
    %87 = arith.extui %86 : vector<8x128xi1> to vector<8x128xi32>
    %88 = arith.sitofp %87 : vector<8x128xi32> to vector<8x128xf32>
    %cst_46 = arith.constant 1.000000e+00 : f32
    %89 = vector.broadcast %cst_46 : f32 to vector<8x128xf32>
    %90 = arith.subf %89, %88 : vector<8x128xf32>
    %91 = arith.mulf %84, %90 : vector<8x128xf32>
    %c0_47 = arith.constant 0 : index
    %c0_48 = arith.constant 0 : index
    %92 = vector.load %arg14[%c0_47, %c0_48] : memref<8x128xf32, #tpu.memory_space<vmem>>, vector<8x128xf32>
    tpu.vector_store %arg14[%c0_47, %c0_48], %91 {strides = array<i32>} : memref<8x128xf32, #tpu.memory_space<vmem>>, vector<8x128xf32>,
    %c0_49 = arith.constant 0 : index
    %c0_50 = arith.constant 0 : index
    %c0_51 = arith.constant 0 : index
    %c0_52 = arith.constant 0 : index
    %93 = vector.load %arg12[%c0_49, %c0_50, %c0_51, %c0_52] : memref<1x1x8x128xf32, #tpu.memory_space<vmem>>, vector<1x1x8x128xf32>
    %94 = vector.shape_cast %93 : vector<1x1x8x128xf32> to vector<8x128xf32>
    %95 = vector.shape_cast %88 : vector<8x128xf32> to vector<1x1x8x128xf32>
    tpu.vector_store %arg12[%c0_49, %c0_50, %c0_51, %c0_52], %95 {strides = array<i32>} : memref<1x1x8x128xf32, #tpu.memory_space<vmem>>, vector<1x1x8x128xf32>,
    return
  }
  func.func @transform_0(%arg0: i32, %arg1: i32, %arg2: i32) -> (i32, i32, i32, i32) {
    %c0_i32 = arith.constant 0 : i32
    %c0_i32_0 = arith.constant 0 : i32
    return %arg0, %arg2, %arg1, %c0_i32 : i32, i32, i32, i32
  }
  func.func @transform_1(%arg0: i32, %arg1: i32, %arg2: i32) -> (i32, i32) {
    %c0_i32 = arith.constant 0 : i32
    %c0_i32_0 = arith.constant 0 : i32
    %c0_i32_1 = arith.constant 0 : i32
    return %c0_i32, %c0_i32_0 : i32, i32
  }
  func.func @transform_2(%arg0: i32, %arg1: i32, %arg2: i32) -> (i32, i32) {
    %c0_i32 = arith.constant 0 : i32
    %c0_i32_0 = arith.constant 0 : i32
    %c0_i32_1 = arith.constant 0 : i32
    return %c0_i32, %c0_i32_0 : i32, i32
  }
  func.func @transform_3(%arg0: i32, %arg1: i32, %arg2: i32) -> (i32, i32) {
    %c0_i32 = arith.constant 0 : i32
    %c0_i32_0 = arith.constant 0 : i32
    %c0_i32_1 = arith.constant 0 : i32
    return %c0_i32, %c0_i32_0 : i32, i32
  }
  func.func @transform_4(%arg0: i32, %arg1: i32, %arg2: i32) -> (i32, i32) {
    %c0_i32 = arith.constant 0 : i32
    %c0_i32_0 = arith.constant 0 : i32
    %c0_i32_1 = arith.constant 0 : i32
    return %c0_i32, %c0_i32_0 : i32, i32
  }
  func.func @transform_5(%arg0: i32, %arg1: i32, %arg2: i32) -> (i32, i32) {
    %c0_i32 = arith.constant 0 : i32
    %c0_i32_0 = arith.constant 0 : i32
    %c0_i32_1 = arith.constant 0 : i32
    return %c0_i32, %c0_i32_0 : i32, i32
  }
  func.func @transform_6(%arg0: i32, %arg1: i32, %arg2: i32) -> (i32, i32) {
    %c0_i32 = arith.constant 0 : i32
    %c0_i32_0 = arith.constant 0 : i32
    %c0_i32_1 = arith.constant 0 : i32
    return %c0_i32, %c0_i32_0 : i32, i32
  }
  func.func @transform_7(%arg0: i32, %arg1: i32, %arg2: i32) -> (i32, i32) {
    %c0_i32 = arith.constant 0 : i32
    %c0_i32_0 = arith.constant 0 : i32
    %c0_i32_1 = arith.constant 0 : i32
    return %c0_i32, %c0_i32_0 : i32, i32
  }
  func.func @transform_8(%arg0: i32, %arg1: i32, %arg2: i32) -> (i32, i32) {
    %c0_i32 = arith.constant 0 : i32
    %c0_i32_0 = arith.constant 0 : i32
    %c0_i32_1 = arith.constant 0 : i32
    return %c0_i32, %c0_i32_0 : i32, i32
  }
  func.func @transform_9(%arg0: i32, %arg1: i32, %arg2: i32) -> (i32, i32, i32, i32) {
    %c0_i32 = arith.constant 0 : i32
    %c0_i32_0 = arith.constant 0 : i32
    return %arg0, %arg2, %arg1, %c0_i32 : i32, i32, i32, i32
  }
}

</mosaic_0001>

<bundles_post_ra>
// kernel: mlp_forward.1
= control target key start
LH: loop header
LB: loop body
LE: loop exit
PB: predicated region body
PF: predicated region fallthrough
CT: control target
= control target key end

     0   :  { %14 = vsyncpa [#allocation5], 0  ;;  %s1254_s0 = inlined_call_operand.vmem [shape: f32[2,4,8,16], index: 0, kind: input, shape index: {}]   ;;  %s1255_s1 = inlined_call_operand.vmem [shape: bf16[16,128], index: 1, kind: input, shape index: {}]   ;;  %s1256_s2 = inlined_call_operand.vmem [shape: f32[1,128], index: 2, kind: input, shape index: {}]   ;;  %s1257_s3 = inlined_call_operand.vmem [shape: f32[1,128], index: 3, kind: input, shape index: {}]   ;;  %s1258_s4 = inlined_call_operand.vmem [shape: f32[1,128], index: 4, kind: input, shape index: {}]   ;;  %s1259_s5 = inlined_call_operand.vmem [shape: bf16[128,128], index: 5, kind: input, shape index: {}]   ;;  %s1260_s6 = inlined_call_operand.vmem [shape: f32[1,128], index: 6, kind: input, shape index: {}]   ;;  %s1261_s7 = inlined_call_operand.vmem [shape: f32[1,128], index: 7, kind: input, shape index: {}]   ;;  %s1262_s8 = inlined_call_operand.vmem [shape: f32[1,128], index: 8, kind: input, shape index: {}]   ;;  %s1263_s9 = inlined_call_operand.hbm [shape: f32[2,4,8,128], index: 9, kind: output, shape index: {}]  }
   0x1   :  { %16 = vsyncpa [#allocation5 + $0x1], 0  ;;  %s1047_s30 = smov 0   ;;  %s1049_s10 = smov 0  }
   0x2   :  { %s1051_s11 = smov 0   ;;  %s1053_s12 = smov 0  }
   0x3   :  { %s1055_s13 = smov 0   ;;  %s1057_s14 = smov 0  }
   0x4   :  { %s1059_s15 = smov 0   ;;  %s1061_s16 = smov 0  }
   0x5 LB: > { %1269 = sst [smem:[#allocation7_spill]] %s982_s14  ;;  %s737_s17 = sadd.s32 4294967295, %s990_s16   ;;  %s990_s16 = sphi %s1061_s16, %s22_s16   ;;  %s986_s15 = sphi %s1059_s15, %s1279_s15   ;;  %s982_s14 = sphi %s1057_s14, %s1278_s14   ;;  %s978_s13 = sphi %s1055_s13, %s1277_s13   ;;  %s974_s12 = sphi %s1053_s12, %s1276_s12   ;;  %s970_s11 = sphi %s1051_s11, %s1282_s11   ;;  %s966_s10 = sphi %s1049_s10, %s1281_s10   ;;  %s962_s30 = sphi %s1047_s30, %s1280_s30  }
   0x6   : > { %1270 = sst [smem:[#allocation8_spill]] %s986_s15  ;;  %s738_s18 = sadd.s32 4294967294, %s990_s16  }
   0x7   : > { %s34_s19 = sadd.s32 1, %s982_s14  ;;  %s41_s20 = sadd.s32 1, %s986_s15 }
   0x8   : > { %p35_p0 = scmp.ge.s32.totalorder %s34_s19, 4  ;;  %p260_p1 = scmp.ne.s32.totalorder %s970_s11, %s966_s10 }
   0x9   : > { %p261_p2 = scmp.eq.s32.totalorder %s737_s17, 7  ;;  %p266_p5 = scmp.ne.s32.totalorder %s966_s10, %s962_s30 }
   0xa   : > { %s1284_s19 = smov (%p35_p0, %s34_s19), 0  ;;  %s1286_s20 = smov (!%p35_p0, %s41_s20), %s986_s15 }
   0xb   : > { %1271 = sst [smem:[#allocation9_spill]] %s1284_s19  ;;  %s244_s21 = ssub.s32 %s982_s14, %s1284_s19 }
   0xc   : > { %p1098_p3 = por %p261_p2, %p260_p1  ;;  %p43_p4 = scmp.ge.s32.totalorder %s1286_s20, 2 }
   0xd   : > { %p267_p6 = scmp.eq.s32.totalorder %s738_s18, 7  ;;  %p741_p7 = scmp.ge.s32.totalorder %s990_s16, 1 }
   0xe   : > { %s1288_s20 = smov (%p43_p4, %s1286_s20), 0  ;;  %p323_p9 = scmp.lt.s32.totalorder %s990_s16, 9 }
   0xf   : > { %1273 = sst [smem:[#allocation10_spill]] %s1288_s20  ;;  %p1107_p8 = por %p267_p6, %p266_p5 }
  0x10   : > { %s243_s24 = ssub.s32 %s986_s15, %s1288_s20  ;;  %s250_s25 = sadd.s32 1, %s970_s11 }
  0x11   : > { %s245_s26 = sor.u32 %s244_s21, %s243_s24  ;;  %p324_p10 = pnand %p741_p7, %p323_p9 }
  0x12   : > { %p248_p11 = scmp.eq.s32.totalorder %s245_s26, 0  ;;  %s1267_s28 = sand.u32 (!%p324_p10), 1, %s966_s10  }
  0x13   : > { %327 = sbr.rel (%p324_p10) target bundleno = 838 (0x346), region = 56  ;;  %p365_p12 = scmp.lt.s32.totalorder (!%p324_p10), %s978_s13, 1 }
  0x14   : > { %s1116_s27 = scalar_select %p248_p11, %s970_s11, %s250_s25  }
  0x15   : > { %s1122_s29 = sshll.u32 (!%p324_p10), %s1267_s28, 3  ;;  %p367_p13 = scmp.lt.s32.totalorder (!%p324_p10), %s974_s12, 3 }
  0x16   : > { %s364_s15 = scalar_lea.vmem (!%p324_p10), [#allocation4], %s1122_s29  ;;  %p745_p0 = scmp.ne.s32.totalorder (!%p324_p10), %s974_s12, 0 }
  0x1a   : > { %s366_s17 = scalar_select %p365_p12, %s978_s13, 1 }
  0x1b   : > { %s368_s18 = scalar_select %p367_p13, %s974_s12, 3 }
  0x1c   : > { %s743_s21 = sshll.u32 %s366_s17, 2  ;;  %380 = sbr.rel (%p745_p0) target bundleno = 35 (0x23), region = 60  ;;  %v992_v0 = vmov (!%p745_p0), 0.0  }
  0x1d   : > { %s373_s24 = sadd.s32 %s743_s21, %s368_s18  ;;  %381 = vst [vmem:[#allocation2] sm:$0xff] (!%p745_p0), %v992_v0  ;;  %382 = vst [vmem:[#allocation3] sm:$0xff] (!%p745_p0), %v992_v0 }
  0x1e   : > { %s744_s25 = sshll.u32 %s373_s24, 3 }
  0x1f   : > { %s375_s19 = scalar_lea.vmem %s1254_s0, %s744_s25 }
  0x23 PF: > { %v883_v1 = vld [vmem:[%s1255_s1] sm:$0xff]   ;;  %v993_v2 = vmov 0.0   ;;  %vm400_vm0 = vcmask 130048   ;;  %vm994_vm1 = vmmov 0   ;;  %v885_v13 = vld [vmem:[%s1259_s5 + $0x8] sm:$0xff]   ;;  %v886_v14 = vld [vmem:[%s1259_s5 + $0x10] sm:$0xff]  }
  0x24   : > { %782 = vmatprep.subr.bf16.mxu0 %v993_v2  ;;  %v383_v3 = vld [vmem:[%s375_s19] sm:$0xff]  ;;  %788 = vmatprep.subr.bf16.mxu1 %v993_v2  ;;  %v887_v15 = vld [vmem:[%s1259_s5 + $0x18] sm:$0xff]   ;;  %v889_v17 = vld [vmem:[%s1259_s5 + $0x28] sm:$0xff]   ;;  %v995_v40 = vmov 1.0|1.0   ;;  %s767_s25 = sshll.u32 %s978_s13, 2 }
  0x25   : > { %783 = vmatpush3.bf16.msra.mxu0 %v883_v1  ;;  %784 = vmatprep.mubr.msk.bf16.mxu0 %vm994_vm1, %v993_v2  ;;  %v384_v4 = vpack.c.bf16 %v383_v3, %v383_v3  ;;  %v746_v5 = vld [vmem:[%s1256_s2] ss:$0 sm:$0xff]  ;;  %v890_v18 = vld [vmem:[%s1259_s5 + $0x30] sm:$0xff]   ;;  %v891_v19 = vld [vmem:[%s1259_s5 + $0x38] sm:$0xff]   ;;  %s648_s26 = sadd.s32 %s974_s12, %s767_s25  ;;  %s652_s17 = sshll.u32 %s364_s15, 4  ;;  %s1198_s17 = int_to_ptr.vmem [resolvable:$true] %s652_s17 }
  0x26   : > { %804 = vmatprep.mubr.msk.bf16.mxu1 %vm994_vm1, %v993_v2  ;;  %v884_v12 = vld [vmem:[%s1259_s5] sm:$0xff]   ;;  %v624_v62 = vld [vmem:[#allocation3] sm:$0xff]  ;;  %s768_s20 = sshll.u32 %s648_s26, 7  ;;  %s1275_s12 = sand.u32 1, %s966_s10  }
  0x27   : > { %789 = vmatpush3.bf16.msra.mxu1 %v884_v12  ;;  %v888_v16 = vld [vmem:[%s1259_s5 + $0x20] sm:$0xff]   ;;  %s1196_s28 = scalar_lea.hbm %s1263_s9, %s768_s20  ;;  %s636_s13 = scalar_lea.sflag [#allocation5], %s1275_s12 }
  0x28   : > { %785 = vmatmul.mubr.msk.bf16.vlgmr.msra.gmra.mrb[0].mxu0 %vm400_vm0, %v384_v4  ;;  %790 = vmatprep.subr.bf16.mxu1 %v993_v2  ;;  %v749_v29 = vld [vmem:[%s1257_s3] ss:$0 sm:$0xff]  ;;  %s896_s18 = scalar_lea.vmem %s1198_s17, 128  ;;  %s996_s21 = smov [#allocation4]  }
  0x29   : > { %v750_v31 = vld [vmem:[%s1258_s4] ss:$0 sm:$0xff]  ;;  %p897_p1 = scmp.ne.s32.totalorder %s1198_s17, %s896_s18  ;;  %s900_s24 = sshll.u32 %s996_s21, 4  ;;  %s901_s24 = int_to_ptr.vmem [resolvable:$false] %s900_s24 }
  0x2a   : > { %v473_v33 = vld [vmem:[#allocation2] sm:$0xff]  ;;  %s902_s25 = scalar_lea.vmem %s901_s24, 256  ;;  %p903_p5 = scmp.lt.s32.totalorder %s1198_s17, %s901_s24 }
  0x2b   : > { %791 = vmatpush3.bf16.msra.mxu1 %v885_v13  ;;  %v752_v42 = vld [vmem:[%s1260_s6] ss:$0 sm:$0xff]  ;;  %p898_p2 = pnand %p897_p1, %p1098_p3  ;;  %p904_p6 = scmp.lt.s32.totalorder %s902_s25, %s896_s18 }
  0x2c   : > { %792 = vmatprep.subr.bf16.mxu1 %v993_v2  ;;  %v763_v58 = vld [vmem:[%s1261_s7] ss:$0 sm:$0xff] }
  0x2d   : > { %v764_v60 = vld [vmem:[%s1262_s8] ss:$0 sm:$0xff]  ;;  %p899_p4 = pneg %p898_p2  ;;  %p905_p7 = por %p904_p6, %p903_p5 }
  0x2f   : > { %793 = vmatpush3.bf16.msra.mxu1 %v886_v14  ;;  %p906_p9 = pnand %p905_p7, %p899_p4 }
  0x30   : > { %794 = vmatprep.subr.bf16.mxu1 %v993_v2 }
  0x33   : > { %795 = vmatpush3.bf16.msra.mxu1 %v887_v15 }
  0x34   : > { %796 = vmatprep.subr.bf16.mxu1 %v993_v2 }
  0x37   : > { %797 = vmatpush3.bf16.msra.mxu1 %v888_v16 }
  0x38   : > { %798 = vmatprep.subr.bf16.mxu1 %v993_v2 }
  0x3b   : > { %799 = vmatpush3.bf16.msra.mxu1 %v889_v17 }
  0x3c   : > { %800 = vmatprep.subr.bf16.mxu1 %v993_v2 }
  0x3f   : > { %801 = vmatpush3.bf16.msra.mxu1 %v890_v18 }
  0x40   : > { %802 = vmatprep.subr.bf16.mxu1 %v993_v2 }
  0x43   : > { %803 = vmatpush3.bf16.msra.mxu1 %v891_v19 }
  0xfb   : > { %v438_v6 = vpop.f32.mrb[0].mxu0 }
  0xfc   : > { %v439_v7 = vadd.f32 %v746_v5, %v438_v6  ;;  %v786_v8 = vpop.f32.mrb[1].mxu0 }
  0xfd   : > { %v441_v9 = vpop.f32.mrb[2].mxu0 }
  0xfe   : > { %444 = vadd.xlane.f32.xlu0 %v439_v7  ;;  %v787_v10 = vpop.f32.mrb[3].mxu0  ;;  %v447_v11 = vmul.f32 %v439_v7, %v439_v7 }
 0x102   : > { %448 = vadd.xlane.f32.xlu0 %v447_v11 }
 0x18b   : > { %v445_v20 = vpop.xlane.xlu0 %444 }
 0x18c   : > { %v446_v21 = vmul.f32 0.03125, %v445_v20 }
 0x18e   : > { %v451_v23 = vmul.f32 %v446_v21, %v446_v21  ;;  %v453_v27 = vsub.f32 %v439_v7, %v446_v21 }
 0x18f   : > { %v449_v22 = vpop.xlane.xlu0 %448 }
 0x190   : > { %v450_v24 = vmul.f32 0.03125, %v449_v22 }
 0x192   : > { %v452_v25 = vsub.f32 %v450_v24, %v451_v23 }
 0x194   : > { %v454_v26 = vadd.f32 1e-05, %v452_v25 }
 0x196   : > { %892 = vrsqrt.f32 %v454_v26 }
 0x1a0   : > { %v893_v28 = vpop.eup %892 }
 0x1a1   : > { %v456_v30 = vmul.f32 %v893_v28, %v453_v27 }
 0x1a3   : > { %v464_v32 = vmul.f32 %v749_v29, %v456_v30 }
 0x1a5   : > { %v472_v34 = vadd.f32 %v750_v31, %v464_v32 }
 0x1a7   : > { %v474_v35 = vsub.f32 %v472_v34, %v473_v33 }
 0x1a9   : > { %v475_v36 = vmul.f32 0.5, %v474_v35 }
 0x1ab   : > { %v476_v37 = vadd.f32 %v475_v36, %v473_v33 }
 0x1ad   : > { %vm477_vm2 = vcmp.ge.f32.partialorder %v476_v37, 1.0 }
 0x1ae   : > { %v751_v38 = vsel %vm477_vm2, 1.0, %v993_v2  ;;  %vm761_vm3 = vmpackc.low %vm477_vm2, %vm477_vm2 }
 0x1af   : > { %v480_v39 = vsub.f32 1.0, %v751_v38  ;;  %805 = vmatmul.mubr.msk.bf16.vlgmr.msra.gmra.mrb[0].mxu1 %vm761_vm3, %v995_v40 }
 0x1b1   : > { %v481_v41 = vmul.f32 %v480_v39, %v476_v37 }
 0x1b3   : > { %482 = vst [vmem:[#allocation2] sm:$0xff] %v481_v41 }
 0x282   : > { %v589_v43 = vpop.f32.mrb[0].mxu1 }
 0x283   : > { %v590_v44 = vadd.f32 %v752_v42, %v589_v43  ;;  %v806_v45 = vpop.f32.mrb[1].mxu1 }
 0x284   : > { %v592_v46 = vpop.f32.mrb[2].mxu1 }
 0x285   : > { %595 = vadd.xlane.f32.xlu1 %v590_v44  ;;  %v807_v47 = vpop.f32.mrb[3].mxu1  ;;  %v598_v48 = vmul.f32 %v590_v44, %v590_v44 }
 0x289   : > { %599 = vadd.xlane.f32.xlu1 %v598_v48 }
 0x312   : > { %v596_v49 = vpop.xlane.xlu1 %595 }
 0x313   : > { %v597_v50 = vmul.f32 0.0625, %v596_v49 }
 0x315   : > { %v602_v52 = vmul.f32 %v597_v50, %v597_v50  ;;  %v604_v56 = vsub.f32 %v590_v44, %v597_v50 }
 0x316   : > { %v600_v51 = vpop.xlane.xlu1 %599 }
 0x317   : > { %v601_v53 = vmul.f32 0.0625, %v600_v51 }
 0x319   : > { %v603_v54 = vsub.f32 %v601_v53, %v602_v52 }
 0x31b   : > { %v605_v55 = vadd.f32 1e-05, %v603_v54 }
 0x31d   : > { %894 = vrsqrt.f32 %v605_v55 }
 0x327   : > { %v895_v57 = vpop.eup %894 }
 0x328   : > { %v607_v59 = vmul.f32 %v895_v57, %v604_v56 }
 0x32a   : > { %v615_v61 = vmul.f32 %v763_v58, %v607_v59 }
 0x32c   : > { %v623_v63 = vadd.f32 %v764_v60, %v615_v61 }
 0x32e   : > { %v625_v0 = vsub.f32 %v623_v63, %v624_v62 }
 0x330   : > { %v626_v1 = vmul.f32 0.5, %v625_v0 }
 0x332   : > { %v627_v3 = vadd.f32 %v626_v1, %v624_v62 }
 0x334   : > { %vm628_vm4 = vcmp.ge.f32.partialorder %v627_v3, 1.0 }
 0x335   : > { %v765_v4 = vsel %vm628_vm4, 1.0, %v993_v2 }
 0x336   : > { %v631_v5 = vsub.f32 1.0, %v765_v4  ;;  %634 = vst [vmem:[%s364_s15] sm:$0xff] %v765_v4 }
 0x337   : > { %909 = shalt.err (!%p906_p9)
}
 0x338   : > { %s910_s15 = scalar_lea.hbm %s1196_s28, 128  ;;  %s914_s20 = scalar_lea.hbm %s1263_s9, 1024 }
 0x339   : > { %p911_p10 = scmp.ne.s32.totalorder %s1196_s28, %s910_s15  ;;  %p915_p13 = scmp.lt.u32.totalorder %s1196_s28, %s1263_s9 }
 0x33a   : > { %p916_p0 = scmp.lt.u32.totalorder %s914_s20, %s910_s15  ;;  %p918_p2 = scmp.lt.u32.totalorder %s910_s15, %s1196_s28 }
 0x33b   : > { %p912_p11 = pnand %p911_p10, %p1098_p3 }
 0x33c   : > { %p917_p1 = por %p916_p0, %p915_p13 }
 0x33d   : > { %p913_p12 = pneg %p912_p11 }
 0x33e   : > { %p919_p4 = por %p918_p2, %p917_p1 }
 0x340   : > { %p920_p5 = pnand %p919_p4, %p913_p12 }
 0x342   : > { %923 = shalt.err (!%p920_p5)
}
 0x343   : > { %808 = dma.vmem_to_hbm [thread:$0]  (%p1098_p3), %s1198_s17, 128, %s1196_s28, %s636_s13   ;;  %v632_v2 = vmul.f32 %v631_v5, %v627_v3 }
 0x345   : > { %633 = vst [vmem:[#allocation3] sm:$0xff] %v632_v2 }
 0x346 PF: > { %p814_p6 = scmp.ge.s32.totalorder %s990_s16, 2  ;;  %s664_s12 = sand.u32 1, %s962_s30  }
 0x347   : > { %s665_s18 = scalar_lea.sflag [#allocation5], %s664_s12 }
 0x348   : > { %p811_p7 = pnand %p814_p6, %p1107_p8 }
 0x34a   : > { %957 = dma.done.wait (!%p811_p7), %s665_s18, 128  }
 0x34b   : > { %959 = vsyncadd (!%p811_p7), %s665_s18, 4294967168  ;;  %s22_s16 = sadd.s32 1, %s990_s16   ;;  %s1276_s12 = sld [smem:[#allocation7_spill]] }
 0x34c   : > { %p19_p9 = scmp.ge.s32.totalorder %s22_s16, 10   ;;  %s1277_s13 = sld [smem:[#allocation8_spill]] }
 0x34d   : > { %s1278_s14 = sld [smem:[#allocation9_spill]]  ;;  %s1279_s15 = sld [smem:[#allocation10_spill]] }
 0x34e   : > { %s1280_s30 = smov %s966_s10  ;;  %s1281_s10 = smov %s970_s11 }
 0x34f   : > { %s1282_s11 = smov %s1116_s27  ;;  %21 = sbr.rel (!%p19_p9) target bundleno = 5 (0x5), region = 95 }
 0x356   :  { %670 = vsyncpa [#allocation5], 1 }
 0x357   :  { %672 = vsyncpa [#allocation5 + $0x1], 1 }

</bundles_post_ra>
